<compile_context>
chip_gen: v7x
topology: tpu7x:2x2x1
jax: 0.10.0
libtpu: 0.0.40
codegen_flags: <defaults>
</compile_context>

<pallas_src>
import math

import jax
import jax.numpy as jnp
from jax.experimental import pallas as pl
from jax.experimental.pallas import tpu as pltpu


_WIDTH = 1024          # lane-dense slab width (multiple of 128 -> unmasked vst)
_MAX_TILE_ROWS = 512   # 512 x 1024 x 4B = 2 MiB/block; in+out x 2 bufs = 8 MiB VMEM


def _round_up(a: int, b: int) -> int:
    return -(-a // b) * b


def _feed_kernel(x_ref, o_ref):
    # TODO(synk): NetworkBehavior.forward() is abstract (raises
    # NotImplementedError) — there is no network body to implement here.
    # feed(x) without DataParallel is a pure identity hand-off of x.
    o_ref[...] = x_ref[...]


@jax.jit
def network_behavior_feed(x):
    """Pallas equivalent of NetworkBehavior.feed(x) (non-DataParallel path).

    Accepts any shape/dtype; returns a tensor identical to x.
    """
    orig_shape = x.shape
    total = math.prod(orig_shape) if orig_shape else 1

    if total == 0:
        # Nothing to move; identity of an empty tensor.
        return x

    # Flatten to a wide lane-dense 2-D slab.  Only pad (an extra HBM copy)
    # when the size is ragged or the row count must be rounded to a tile.
    rows = _round_up(total, _WIDTH) // _WIDTH
    if rows <= _MAX_TILE_ROWS:
        # Single block equal to the full array dims — always legal, no row
        # padding required regardless of dtype packing.
        tile_rows = rows
        rows_padded = rows
    else:
        tile_rows = _MAX_TILE_ROWS
        rows_padded = _round_up(rows, tile_rows)
    padded_total = rows_padded * _WIDTH

    flat = x.reshape(-1)
    if padded_total != total:
        flat = jnp.pad(flat, (0, padded_total - total))
    x2d = flat.reshape(rows_padded, _WIDTH)

    grid = (rows_padded // tile_rows,)

    out2d = pl.pallas_call(
        _feed_kernel,
        out_shape=jax.ShapeDtypeStruct((rows_padded, _WIDTH), x.dtype),
        grid_spec=pltpu.PrefetchScalarGridSpec(
            num_scalar_prefetch=0,
            grid=grid,
            in_specs=[pl.BlockSpec((tile_rows, _WIDTH), lambda i: (i, 0))],
            out_specs=pl.BlockSpec((tile_rows, _WIDTH), lambda i: (i, 0)),
        ),
        compiler_params=pltpu.CompilerParams(
            dimension_semantics=("parallel",),
        ),
        # Zero-copy identity: output buffer aliases the input buffer so XLA
        # can elide the HBM round-trip for this pure pass-through.
        input_output_aliases={0: 0},
    )(x2d)

    out = out2d.reshape(-1)
    if padded_total != total:
        out = out[:total]
    return out.reshape(orig_shape)


if __name__ == "__main__":
    key = jax.random.PRNGKey(0)
    # Small NCHW input consistent with what a concrete subclass would feed.
    x = jax.random.normal(key, (2, 4, 16, 16), dtype=jnp.float32)

    y = network_behavior_feed(x)
    y = jax.block_until_ready(y)

    # Sanity check: feed() with no DataParallel is a pure pass-through of x
    # into the (abstract) forward; our kernel preserves the tensor exactly.
    assert y.shape == x.shape and y.dtype == x.dtype
    assert bool(jnp.all(y == x))

    print("KERNEL_OK")
</pallas_src>

<mosaic_0001>
module attributes {stable_mosaic.version = 11 : i64} {
  func.func @_feed_kernel(%arg0: i32, %arg1: memref<2x1024xf32, #tpu.memory_space<vmem>>, %arg2: memref<2x1024xf32, #tpu.memory_space<vmem>>) attributes {dimension_semantics = [#tpu.dimension_semantics<parallel>], iteration_bounds = array<i64: 1>, scalar_prefetch = 0 : i64, scratch_operands = 0 : i64, tpu.core_type = #tpu.core_type<tc>, window_params = [{transform_indices = @transform_0, window_bounds = array<i64: 2, 1024>}, {transform_indices = @transform_1, window_bounds = array<i64: 2, 1024>}]} {
    %c0 = arith.constant 0 : index
    %c0_0 = arith.constant 0 : index
    %0 = vector.load %arg1[%c0, %c0_0] : memref<2x1024xf32, #tpu.memory_space<vmem>>, vector<2x1024xf32>
    %c0_1 = arith.constant 0 : index
    %c0_2 = arith.constant 0 : index
    %1 = vector.load %arg2[%c0_1, %c0_2] : memref<2x1024xf32, #tpu.memory_space<vmem>>, vector<2x1024xf32>
    tpu.vector_store %arg2[%c0_1, %c0_2], %0 {strides = array<i32>} : memref<2x1024xf32, #tpu.memory_space<vmem>>, vector<2x1024xf32>,
    return
  }
  func.func @transform_0(%arg0: i32) -> (i32, i32) {
    %c0_i32 = arith.constant 0 : i32
    %c0_i32_0 = arith.constant 0 : i32
    return %arg0, %c0_i32 : i32, i32
  }
  func.func @transform_1(%arg0: i32) -> (i32, i32) {
    %c0_i32 = arith.constant 0 : i32
    %c0_i32_0 = arith.constant 0 : i32
    return %arg0, %c0_i32 : i32, i32
  }
}

</mosaic_0001>

<bundles_post_ra>
// kernel: network_behavior_feed.1
= control target key start
LH: loop header
LB: loop body
LE: loop exit
PB: predicated region body
PF: predicated region fallthrough
CT: control target
= control target key end

     0   :  { %s38_s0 = inlined_call_operand.vmem [shape: f32[2,1024], index: 0, kind: input, shape index: {}, may-alias: {0,1}]   ;;  %s39_s1 = inlined_call_operand.vmem [shape: f32[2,1024], index: 1, kind: output, shape index: {}, may-alias: {0,1}]  }
   0x1   :  { %v8_v0 = vld [vmem:[%s38_s0] sm:$0xff]  ;;  %v9_v1 = vld [vmem:[%s38_s0 + $0x8] sm:$0xff] }
   0x2   :  { %10 = vst [vmem:[%s39_s1] sm:$0xff] %v8_v0  ;;  %11 = vst [vmem:[%s39_s1 + $0x8] sm:$0xff] %v9_v1 }

</bundles_post_ra>
